<compile_context>
chip_gen: v7x
topology: tpu7x:2x2x1
jax: 0.10.0
libtpu: 0.0.40
codegen_flags: <defaults>
</compile_context>

<pallas_src>
import jax
import jax.numpy as jnp
from jax.experimental import pallas as pl
from jax.experimental.pallas import tpu as pltpu


def _linear_reshape_cat_kernel(x_ref, wb_ref, o_ref):
    # x_ref : (2, 3) f32 in SMEM  -> read as scalars (no vector input DMA for x)
    # wb_ref: (4, 2) f32 in VMEM  -> rows 0..2 = W^T, row 3 = bias
    wb = wb_ref[...]
    w0 = wb[0:1, :]
    w1 = wb[1:2, :]
    w2 = wb[2:3, :]
    bias = wb[3:4, :]

    # y[i, :] = sum_k x[i, k] * W^T[k, :] + b   (scalar->vreg broadcast FMAs)
    row0 = x_ref[0, 0] * w0 + x_ref[0, 1] * w1 + x_ref[0, 2] * w2 + bias  # (1, 2)
    row1 = x_ref[1, 0] * w0 + x_ref[1, 1] * w1 + x_ref[1, 2] * w2 + bias  # (1, 2)

    # reshape (2,2)->(2,2) is identity; cat((y, y), dim=0) -> (4, 2).
    # Build the whole tile in registers, single full-view store.
    o_ref[...] = jnp.concatenate([row0, row1, row0, row1], axis=0).astype(o_ref.dtype)


def pack_params(w, b):
    """One-time parameter packing (hoisted out of the per-call hot path).

    w: (2, 3) f32 (out_features, in_features), b: (2,) f32 -> wb: (4, 2) f32.
    """
    assert w.shape == (2, 3) and b.shape == (2,)
    return jnp.concatenate([w.T, b.reshape(1, 2)], axis=0)  # (4, 2)


def model_forward(x, wb):
    """x: (2, 3) f32, wb: (4, 2) f32 pre-packed [W^T; b] -> (4, 2) f32."""
    assert x.shape == (2, 3), "reshape to (2, 2) requires input of shape (2, 3)"
    assert wb.shape == (4, 2)

    return pl.pallas_call(
        _linear_reshape_cat_kernel,
        out_shape=jax.ShapeDtypeStruct((4, 2), jnp.float32),
        in_specs=[
            # x as SMEM scalars -> zero vector input DMAs for the per-call data.
            pl.BlockSpec(memory_space=pltpu.MemorySpace.SMEM),
            # packed params: the single VMEM input DMA of the kernel.
            pl.BlockSpec((4, 2), lambda: (0, 0)),
        ],
        out_specs=pl.BlockSpec((4, 2), lambda: (0, 0)),
        cost_estimate=pl.CostEstimate(
            flops=24,                      # 2*2*3 MACs
            transcendentals=0,
            bytes_accessed=(2 * 3 + 4 * 2 + 4 * 2) * 4,
        ),
    )(x, wb)


if __name__ == "__main__":
    key = jax.random.PRNGKey(0)
    kx, kw, kb = jax.random.split(key, 3)

    # Input consistent with the forward pass (see shape note): (2, 3)
    x = jax.random.normal(kx, (2, 3), dtype=jnp.float32)

    # Deterministic Linear(3, 2) parameters (PyTorch-style uniform bound 1/sqrt(3))
    bound = 1.0 / jnp.sqrt(3.0)
    w = jax.random.uniform(kw, (2, 3), minval=-bound, maxval=bound, dtype=jnp.float32)
    b = jax.random.uniform(kb, (2,), minval=-bound, maxval=bound, dtype=jnp.float32)

    # One-time param packing (outside the forward hot path).
    wb = jax.block_until_ready(pack_params(w, b))

    out = model_forward(x, wb)
    jax.block_until_ready(out)

    # Pure-JAX reference check
    y_ref = (x @ w.T + b).reshape(2, 2)
    ref = jnp.concatenate([y_ref, y_ref], axis=0)
    assert out.shape == (4, 2)
    assert jnp.allclose(out, ref, atol=1e-5), "mismatch vs reference"

    print("KERNEL_OK")
</pallas_src>

<mosaic_0001>
module attributes {stable_mosaic.version = 11 : i64} {
  func.func @_linear_reshape_cat_kernel(%arg0: memref<2x3xf32, #tpu.memory_space<smem>>, %arg1: memref<4x2xf32, #tpu.memory_space<vmem>>, %arg2: memref<4x2xf32, #tpu.memory_space<vmem>>) attributes {dimension_semantics = [], scalar_prefetch = 0 : i64, scratch_operands = 0 : i64, tpu.core_type = #tpu.core_type<tc>} {
    %c0 = arith.constant 0 : index
    %c0_0 = arith.constant 0 : index
    %0 = vector.load %arg1[%c0, %c0_0] : memref<4x2xf32, #tpu.memory_space<vmem>>, vector<4x2xf32>
    %1 = vector.extract_strided_slice %0 {offsets = [0, 0], sizes = [1, 2], strides = [1, 1]} : vector<4x2xf32> to vector<1x2xf32>
    %2 = vector.extract_strided_slice %0 {offsets = [1, 0], sizes = [1, 2], strides = [1, 1]} : vector<4x2xf32> to vector<1x2xf32>
    %3 = vector.extract_strided_slice %0 {offsets = [2, 0], sizes = [1, 2], strides = [1, 1]} : vector<4x2xf32> to vector<1x2xf32>
    %4 = vector.extract_strided_slice %0 {offsets = [3, 0], sizes = [1, 2], strides = [1, 1]} : vector<4x2xf32> to vector<1x2xf32>
    %c0_1 = arith.constant 0 : index
    %c0_2 = arith.constant 0 : index
    %5 = memref.load %arg0[%c0_1, %c0_2] : memref<2x3xf32, #tpu.memory_space<smem>>
    %6 = vector.broadcast %5 : f32 to vector<1x2xf32>
    %7 = arith.mulf %6, %1 : vector<1x2xf32>
    %c0_3 = arith.constant 0 : index
    %c1 = arith.constant 1 : index
    %8 = memref.load %arg0[%c0_3, %c1] : memref<2x3xf32, #tpu.memory_space<smem>>
    %9 = vector.broadcast %8 : f32 to vector<1x2xf32>
    %10 = arith.mulf %9, %2 : vector<1x2xf32>
    %11 = arith.addf %7, %10 : vector<1x2xf32>
    %c0_4 = arith.constant 0 : index
    %c2 = arith.constant 2 : index
    %12 = memref.load %arg0[%c0_4, %c2] : memref<2x3xf32, #tpu.memory_space<smem>>
    %13 = vector.broadcast %12 : f32 to vector<1x2xf32>
    %14 = arith.mulf %13, %3 : vector<1x2xf32>
    %15 = arith.addf %11, %14 : vector<1x2xf32>
    %16 = arith.addf %15, %4 : vector<1x2xf32>
    %c1_5 = arith.constant 1 : index
    %c0_6 = arith.constant 0 : index
    %17 = memref.load %arg0[%c1_5, %c0_6] : memref<2x3xf32, #tpu.memory_space<smem>>
    %18 = vector.broadcast %17 : f32 to vector<1x2xf32>
    %19 = arith.mulf %18, %1 : vector<1x2xf32>
    %c1_7 = arith.constant 1 : index
    %c1_8 = arith.constant 1 : index
    %20 = memref.load %arg0[%c1_7, %c1_8] : memref<2x3xf32, #tpu.memory_space<smem>>
    %21 = vector.broadcast %20 : f32 to vector<1x2xf32>
    %22 = arith.mulf %21, %2 : vector<1x2xf32>
    %23 = arith.addf %19, %22 : vector<1x2xf32>
    %c1_9 = arith.constant 1 : index
    %c2_10 = arith.constant 2 : index
    %24 = memref.load %arg0[%c1_9, %c2_10] : memref<2x3xf32, #tpu.memory_space<smem>>
    %25 = vector.broadcast %24 : f32 to vector<1x2xf32>
    %26 = arith.mulf %25, %3 : vector<1x2xf32>
    %27 = arith.addf %23, %26 : vector<1x2xf32>
    %28 = arith.addf %27, %4 : vector<1x2xf32>
    %29 = tpu.concatenate %16, %28, %16, %28 in 0 : vector<1x2xf32>, vector<1x2xf32>, vector<1x2xf32>, vector<1x2xf32> -> vector<4x2xf32>
    %c0_11 = arith.constant 0 : index
    %c0_12 = arith.constant 0 : index
    %30 = vector.load %arg2[%c0_11, %c0_12] : memref<4x2xf32, #tpu.memory_space<vmem>>, vector<4x2xf32>
    tpu.vector_store %arg2[%c0_11, %c0_12], %29 {strides = array<i32>} : memref<4x2xf32, #tpu.memory_space<vmem>>, vector<4x2xf32>,
    return
  }
}

</mosaic_0001>

<bundles_post_ra>
// kernel: tpu_custom_call.1
= control target key start
LH: loop header
LB: loop body
LE: loop exit
PB: predicated region body
PF: predicated region fallthrough
CT: control target
= control target key end

     0   :  { %7 = vsyncpa [#allocation3], 0  ;;  %s130_s0 = inlined_call_operand.vmem [shape: f32[2,3], index: 0, kind: input, shape index: {}]   ;;  %s131_s1 = inlined_call_operand.vmem [shape: f32[4,2], index: 1, kind: input, shape index: {}]   ;;  %s132_s2 = inlined_call_operand.vmem [shape: f32[4,2], index: 2, kind: output, shape index: {}]  }
   0x1   :  { %s14_s11 = sshll.u32 %s130_s0, 4  ;;  %s15_s11 = int_to_ptr.vmem [resolvable:$true] %s14_s11 }
   0x2   :  { %s91_s12 = scalar_lea.vmem %s15_s11, 32  ;;  %p96_p1 = scmp.lt.s32.totalorder %s15_s11, %s15_s11 }
   0x3   :  { %p92_p0 = scmp.ne.s32.totalorder %s15_s11, %s91_s12  ;;  %p97_p2 = scmp.lt.s32.totalorder %s91_s12, %s91_s12 }
   0x5   :  { %p98_p3 = por %p97_p2, %p96_p1 }
   0x7   :  { %p99_p4 = pnand %p98_p3, %p92_p0 }
   0x9   :  { %102 = shalt.err (!%p99_p4)
}
   0xa   :  { %s105_s13 = smov [#allocation2]  }
   0xb   :  { %17 = dma.vmem_to_smem %s15_s11, 32, %s105_s13, [#allocation3]  }
   0xc   :  { %103 = dma.done.wait [#allocation3], 32  }
   0xd   :  { %104 = vsyncadd [#allocation3], 4294967264 }
   0xe   :  { %23 = sfence }
   0xf   :  { %s25_s14 = sld [smem:[#allocation2]]  ;;  %s85_s15 = sld [smem:[#allocation2 + $0x1]]  ;;  %v24_v0 = vld [vmem:[%s131_s1] sm:$0xf]  ;;  %vm72_vm0 = vcmask 1040384   ;;  %vm74_vm1 = vcmask 1041408  }
  0x10   :  { %s86_s16 = sld [smem:[#allocation2 + $0x2]]  ;;  %s87_s17 = sld [smem:[#allocation2 + $0x80]]  ;;  %v43_v16 = vrot.slane %v24_v0, 3  ;;  %vm76_vm2 = vcmask 1042432   ;;  %vm78_vm3 = vcmask 11264  }
  0x11   :  { %s88_s18 = sld [smem:[#allocation2 + $0x81]]  ;;  %s89_s19 = sld [smem:[#allocation2 + $0x82]] }
  0x15   :  { %v26_v1 = vstv %s25_s14  ;;  %v29_v2 = vstv %s85_s15 }
  0x16   :  { %v27_v3 = vmul.f32 %v26_v1, %v24_v0  ;;  %v30_v4 = vmul.f32 %v29_v2, %v24_v0  ;;  %v36_v5 = vstv %s86_s16  ;;  %v47_v6 = vstv %s87_s17 }
  0x17   :  { %v37_v7 = vmul.f32 %v36_v5, %v24_v0  ;;  %v50_v8 = vstv %s88_s18  ;;  %v57_v9 = vstv %s89_s19  ;;  %v48_v11 = vmul.f32 %v47_v6, %v24_v0 }
  0x18   :  { %v32_v10 = vrot.slane %v30_v4, 1  ;;  %v51_v12 = vmul.f32 %v50_v8, %v24_v0  ;;  %v58_v13 = vmul.f32 %v57_v9, %v24_v0 }
  0x19   :  { %v39_v14 = vrot.slane %v37_v7, 2 }
  0x1a   :  { %v34_v15 = vadd.f32 %v32_v10, %v27_v3  ;;  %v53_v17 = vrot.slane %v51_v12, 1  ;;  %v60_v18 = vrot.slane %v58_v13, 2 }
  0x1c   :  { %v41_v19 = vadd.f32 %v39_v14, %v34_v15  ;;  %v55_v20 = vadd.f32 %v53_v17, %v48_v11 }
  0x1e   :  { %v45_v21 = vadd.f32 %v43_v16, %v41_v19  ;;  %v62_v22 = vadd.f32 %v60_v18, %v55_v20 }
  0x20   :  { %v63_v23 = vadd.f32 %v62_v22, %v43_v16  ;;  %v68_v24 = vrot.slane %v45_v21, 6 }
  0x22   :  { %v65_v25 = vrot.slane %v63_v23, 7  ;;  %v70_v26 = vrot.slane %v63_v23, 5 }
  0x24   :  { %v73_v27 = vsel %vm72_vm0, %v45_v21, %v65_v25 }
  0x25   :  { %v75_v28 = vsel %vm74_vm1, %v73_v27, %v68_v24 }
  0x26   :  { %v77_v29 = vsel %vm76_vm2, %v75_v28, %v70_v26 }
  0x27   :  { %79 = vst.msk [vmem:[%s132_s2] sm:$0xf] %vm78_vm3, %v77_v29 }
  0x28   :  { %84 = vsyncpa [#allocation3], 1 }

</bundles_post_ra>
